<compile_context>
chip_gen: v6e
topology: v6e:2x2x1
jax: 0.10.0
libtpu: 0.0.40
codegen_flags: <defaults>
</compile_context>

<pallas_src>
import functools

import jax
import jax.numpy as jnp
from jax import lax
from jax.experimental import pallas as pl
from jax.experimental.pallas import tpu as pltpu


def _round_up(x, m):
    return ((x + m - 1) // m) * m


def physnet_kernel(w_ref, moff_ref, x_ref, params_ref, out_ref, xu_ref,
                   *, K, Cin, KC, L):
    # w_ref:      (nMotif_p, KC_pad)  VMEM f32  softplus(motif_scale) folded into rows;
    #                                           padded rows/cols are zero.
    # moff_ref:   (nMotif_p, 1)       VMEM f32  motif offsets; padded rows = -1e30.
    # x_ref:      (TB, Cin, S_pad)    VMEM bf16 TB whole sequences, positions lane-dense.
    # params_ref: (2,)                SMEM f32  [softplus(scale_unc), offset]
    # out_ref:    (TB, 128)           VMEM f32  per-batch scalar, lane-broadcast slab.
    # xu_ref:     (TB, KC_pad, S_pad) VMEM f32  scratch for the in-VMEM unfold (im2col).
    TB, _, S_pad = x_ref.shape
    nMotif_p, KC_pad = w_ref.shape

    x = x_ref[...].astype(jnp.float32)                       # (TB, Cin, S_pad)

    # In-VMEM unfold: xu[b, k*Cin + c, p] = x[b, c, p + k].  Lane rolls go through the XLU;
    # wrap-around garbage lands at positions p >= L and is masked before the position LSE.
    if KC_pad > KC:   # zero padded contraction rows every step (scratch persists across steps)
        xu_ref[:, KC:, :] = jnp.zeros((TB, KC_pad - KC, S_pad), jnp.float32)
    for k in range(K):
        xk = x if k == 0 else pltpu.roll(x, shift=S_pad - k, axis=2)
        xu_ref[:, k * Cin:(k + 1) * Cin, :] = xk

    # One MXU matmul per batch row: (nMotif_p, KC_pad) @ (KC_pad, S_pad), f32 accumulation.
    # motif_scale is pre-folded into w; motif_offset added below.
    w_b = jnp.broadcast_to(w_ref[...][None], (TB, nMotif_p, KC_pad))
    conv_lin = jnp.einsum('bmk,bkp->bmp', w_b, xu_ref[...],
                          preferred_element_type=jnp.float32)        # (TB, nMotif_p, S_pad)
    conv_lin = conv_lin + moff_ref[...]

    # logsumexp over motifs (axis 1).  Padded motif rows sit at ~-1e30 -> exp underflows to 0.
    m0 = jnp.max(conv_lin, axis=1, keepdims=True)                    # (TB, 1, S_pad)
    lse_m = jnp.log(jnp.sum(jnp.exp(conv_lin - m0), axis=1, keepdims=True)) + m0

    # Mask conv positions falling in the per-sequence lane padding, then logsumexp over
    # positions (axis 2) per batch row.  Every row has >= 1 valid position (L >= 1).
    pos = lax.broadcasted_iota(jnp.int32, (TB, 1, S_pad), 2)
    lse_m = jnp.where(pos < L, lse_m, -jnp.inf)
    m1 = jnp.max(lse_m, axis=2, keepdims=True)                       # (TB, 1, 1)
    s1 = jnp.sum(jnp.exp(lse_m - m1), axis=2, keepdims=True)
    affin = (jnp.log(s1) + m1)[:, 0, :]                              # (TB, 1)

    res = affin * params_ref[0] + params_ref[1]
    out_ref[...] = jnp.broadcast_to(res, out_ref.shape)              # full (TB,128) store


def physnet_forward(x, pwm, motif_scale_unc, motif_offset, scale_unc, offset,
                    *, lane_target=4096, compute_dtype=jnp.bfloat16):
    """x: (B, Cin=4, S); pwm: (nMotif, Cin, K).  Returns (B,) float32.

    compute_dtype controls the streamed activation dtype: bf16 is exact for one-hot /
    small-integer DNA inputs (the normal PhysNet use-case); pass jnp.float32 for soft inputs.
    Weights stay f32 (tiny, resident) and all accumulation is f32.
    """
    B, Cin, S = x.shape
    nMotif, _, K = pwm.shape
    L = S - K + 1
    KC = K * Cin
    assert L >= 1, "PWM wider than the sequence"

    # Pad motif / contraction dims to clean sublane multiples; padded motif rows are
    # neutralized (zero weights, -1e30 offset) so they vanish in the motif logsumexp.
    nMotif_p = _round_up(nMotif, 8)
    KC_pad = _round_up(KC, 8)
    # Lane-align each sequence so the in-kernel rolls stay on clean 128-lane tiles and never
    # mix positions from different sequences.
    S_pad = _round_up(S, 128)

    # Batch-group size: TB whole sequences per grid step (a few thousand lanes) to amortize the
    # ~0.35us per-step cost; softly capped by VMEM (conv_lin temporaries dominate).
    act_bytes = jnp.finfo(compute_dtype).bits // 8
    tb = max(1, lane_target // S_pad)
    bytes_per_batch = (4 * nMotif_p * S_pad * 4          # conv_lin / exp temporaries (f32)
                       + KC_pad * S_pad * 4              # unfold scratch (f32)
                       + 2 * Cin * S_pad * act_bytes)    # double-buffered x block
    tb = min(tb, max(1, (8 * 1024 * 1024) // bytes_per_batch))
    tb = min(tb, B)
    TB = max(8, (tb // 8) * 8)           # multiple of 8 -> unmasked (8,128) output stores
    B_pad = _round_up(B, TB)
    NB = B_pad // TB

    # Activations: no im2col in HBM -- unfold happens in VMEM inside the kernel, so activation
    # HBM traffic is ~1x (plus lane padding) instead of Kx.
    x = x.astype(compute_dtype)
    x = jnp.pad(x, ((0, B_pad - B), (0, 0), (0, S_pad - S)))

    # Weights in im2col layout with softplus(motif_scale) folded in (f32):
    #   w[m, k*Cin + c] = softplus(motif_scale)[m] * pwm[m, c, k]
    mscale = jax.nn.softplus(motif_scale_unc.astype(jnp.float32))
    w = jnp.transpose(pwm.astype(jnp.float32) * mscale[:, None, None], (0, 2, 1))
    w = w.reshape(nMotif, KC)
    w = jnp.pad(w, ((0, nMotif_p - nMotif), (0, KC_pad - KC)))

    moff = jnp.pad(motif_offset.astype(jnp.float32), (0, nMotif_p - nMotif),
                   constant_values=-1e30).reshape(nMotif_p, 1)
    params = jnp.stack([jax.nn.softplus(scale_unc), offset]).astype(jnp.float32)

    kernel = functools.partial(physnet_kernel, K=K, Cin=Cin, KC=KC, L=L)

    out = pl.pallas_call(
        kernel,
        out_shape=jax.ShapeDtypeStruct((B_pad, 128), jnp.float32),
        grid_spec=pltpu.PrefetchScalarGridSpec(
            num_scalar_prefetch=0,
            grid=(NB,),                                               # batch groups only
            in_specs=[
                pl.BlockSpec((nMotif_p, KC_pad), lambda g: (0, 0)),   # folded PWM (resident)
                pl.BlockSpec((nMotif_p, 1), lambda g: (0, 0)),        # motif offsets (resident)
                pl.BlockSpec((TB, Cin, S_pad), lambda g: (g, 0, 0)),  # TB full sequences
                pl.BlockSpec(memory_space=pltpu.MemorySpace.SMEM),    # [scale, offset]
            ],
            out_specs=pl.BlockSpec((TB, 128), lambda g: (g, 0)),
            scratch_shapes=[pltpu.VMEM((TB, KC_pad, S_pad), jnp.float32)],
        ),
        compiler_params=pltpu.CompilerParams(
            dimension_semantics=("parallel",)),   # batch groups shard across TCs on v7x
    )(w, moff, x, params)

    return out[:B, 0]


def physnet_reference(x, pwm, motif_scale_unc, motif_offset, scale_unc, offset):
    """Pure-JAX reference mirroring the PyTorch forward (f32)."""
    mscale = jax.nn.softplus(motif_scale_unc)
    scale = jax.nn.softplus(scale_unc)
    conv = lax.conv_general_dilated(
        x.astype(jnp.float32), pwm.astype(jnp.float32),
        window_strides=(1,), padding="VALID",
        dimension_numbers=("NCH", "OIH", "NCH"))
    conv_lin = conv * mscale[None, :, None] + motif_offset[None, :, None]
    lse_m = jax.scipy.special.logsumexp(conv_lin, axis=1)   # over motifs
    affin = jax.scipy.special.logsumexp(lse_m, axis=1)      # over positions
    return affin * scale + offset


if __name__ == "__main__":
    B, Cin, S = 2, 4, 16          # batch, DNA channels, sequence length
    nMotif, K = 8, 5              # motifs, PWM width -> L = 12

    key = jax.random.PRNGKey(0)
    k_seq, k_pwm = jax.random.split(key)

    # one-hot DNA input, NCW layout (B, 4, S) like the PyTorch module expects
    bases = jax.random.randint(k_seq, (B, S), 0, Cin)
    x = jnp.transpose(jax.nn.one_hot(bases, Cin, dtype=jnp.float32), (0, 2, 1))

    # deterministic "known_pwm" buffer + parameters exactly as in __init__
    pwm = jax.random.normal(k_pwm, (nMotif, Cin, K), dtype=jnp.float32)
    motif_scale_unc = jnp.ones((nMotif,), jnp.float32)
    motif_offset = jnp.zeros((nMotif,), jnp.float32)
    scale_unc = jnp.float32(1.0)
    offset = jnp.float32(0.0)

    out = physnet_forward(x, pwm, motif_scale_unc, motif_offset, scale_unc, offset)
    out = jax.block_until_ready(out)
    assert out.shape == (B,)

    # x is one-hot (exact in bf16) and the kernel keeps weights + accumulation in f32,
    # so it should match the full-f32 reference tightly.
    ref = physnet_reference(x, pwm, motif_scale_unc, motif_offset, scale_unc, offset)
    assert jnp.allclose(out, ref, atol=1e-4, rtol=1e-4), (out, ref)

    print("KERNEL_OK")
</pallas_src>

<mosaic_0001>
module attributes {stable_mosaic.version = 11 : i64} {
  func.func @physnet_kernel(%arg0: i32, %arg1: memref<8x24xf32, #tpu.memory_space<vmem>>, %arg2: memref<8x1xf32, #tpu.memory_space<vmem>>, %arg3: memref<8x4x128xbf16, #tpu.memory_space<vmem>>, %arg4: memref<2xf32, #tpu.memory_space<smem>>, %arg5: memref<8x128xf32, #tpu.memory_space<vmem>>, %arg6: memref<8x24x128xf32, #tpu.memory_space<vmem>>) attributes {dimension_semantics = [#tpu.dimension_semantics<parallel>], iteration_bounds = array<i64: 1>, scalar_prefetch = 0 : i64, scratch_operands = 1 : i64, tpu.core_type = #tpu.core_type<tc>, window_params = [{pipeline_mode = #tpu.pipeline_mode<synchronous>, transform_indices = @transform_0, window_bounds = array<i64: 8, 24>}, {pipeline_mode = #tpu.pipeline_mode<synchronous>, transform_indices = @transform_1, window_bounds = array<i64: 8, 1>}, {transform_indices = @transform_2, window_bounds = array<i64: 8, 4, 128>}, {transform_indices = @transform_3, window_bounds = array<i64: 2>}, {transform_indices = @transform_4, window_bounds = array<i64: 8, 128>}]} {
    %c0 = arith.constant 0 : index
    %c0_0 = arith.constant 0 : index
    %c0_1 = arith.constant 0 : index
    %0 = vector.load %arg3[%c0, %c0_0, %c0_1] : memref<8x4x128xbf16, #tpu.memory_space<vmem>>, vector<8x4x128xbf16>
    %1 = arith.extf %0 : vector<8x4x128xbf16> to vector<8x4x128xf32>
    %cst = arith.constant 0.000000e+00 : f32
    %2 = vector.broadcast %cst : f32 to vector<8x4x128xf32>
    %c0_2 = arith.constant 0 : index
    %c20 = arith.constant 20 : index
    %c0_3 = arith.constant 0 : index
    %3 = vector.load %arg6[%c0_2, %c20, %c0_3] : memref<8x24x128xf32, #tpu.memory_space<vmem>>, vector<8x4x128xf32>
    tpu.vector_store %arg6[%c0_2, %c20, %c0_3], %2 {strides = array<i32>} : memref<8x24x128xf32, #tpu.memory_space<vmem>>, vector<8x4x128xf32>,
    %c0_4 = arith.constant 0 : index
    %c0_5 = arith.constant 0 : index
    %c0_6 = arith.constant 0 : index
    %4 = vector.load %arg6[%c0_4, %c0_5, %c0_6] : memref<8x24x128xf32, #tpu.memory_space<vmem>>, vector<8x4x128xf32>
    tpu.vector_store %arg6[%c0_4, %c0_5, %c0_6], %1 {strides = array<i32>} : memref<8x24x128xf32, #tpu.memory_space<vmem>>, vector<8x4x128xf32>,
    %c127_i32 = arith.constant 127 : i32
    %5 = tpu.dynamic_rotate %1 by %c127_i32 dim 2 : vector<8x4x128xf32>, i32 -> vector<8x4x128xf32>
    %c0_7 = arith.constant 0 : index
    %c4 = arith.constant 4 : index
    %c0_8 = arith.constant 0 : index
    %6 = vector.load %arg6[%c0_7, %c4, %c0_8] : memref<8x24x128xf32, #tpu.memory_space<vmem>>, vector<8x4x128xf32>
    tpu.vector_store %arg6[%c0_7, %c4, %c0_8], %5 {strides = array<i32>} : memref<8x24x128xf32, #tpu.memory_space<vmem>>, vector<8x4x128xf32>,
    %c126_i32 = arith.constant 126 : i32
    %7 = tpu.dynamic_rotate %1 by %c126_i32 dim 2 : vector<8x4x128xf32>, i32 -> vector<8x4x128xf32>
    %c0_9 = arith.constant 0 : index
    %c8 = arith.constant 8 : index
    %c0_10 = arith.constant 0 : index
    %8 = vector.load %arg6[%c0_9, %c8, %c0_10] : memref<8x24x128xf32, #tpu.memory_space<vmem>>, vector<8x4x128xf32>
    tpu.vector_store %arg6[%c0_9, %c8, %c0_10], %7 {strides = array<i32>} : memref<8x24x128xf32, #tpu.memory_space<vmem>>, vector<8x4x128xf32>,
    %c125_i32 = arith.constant 125 : i32
    %9 = tpu.dynamic_rotate %1 by %c125_i32 dim 2 : vector<8x4x128xf32>, i32 -> vector<8x4x128xf32>
    %c0_11 = arith.constant 0 : index
    %c12 = arith.constant 12 : index
    %c0_12 = arith.constant 0 : index
    %10 = vector.load %arg6[%c0_11, %c12, %c0_12] : memref<8x24x128xf32, #tpu.memory_space<vmem>>, vector<8x4x128xf32>
    tpu.vector_store %arg6[%c0_11, %c12, %c0_12], %9 {strides = array<i32>} : memref<8x24x128xf32, #tpu.memory_space<vmem>>, vector<8x4x128xf32>,
    %c124_i32 = arith.constant 124 : i32
    %11 = tpu.dynamic_rotate %1 by %c124_i32 dim 2 : vector<8x4x128xf32>, i32 -> vector<8x4x128xf32>
    %c0_13 = arith.constant 0 : index
    %c16 = arith.constant 16 : index
    %c0_14 = arith.constant 0 : index
    %12 = vector.load %arg6[%c0_13, %c16, %c0_14] : memref<8x24x128xf32, #tpu.memory_space<vmem>>, vector<8x4x128xf32>
    tpu.vector_store %arg6[%c0_13, %c16, %c0_14], %11 {strides = array<i32>} : memref<8x24x128xf32, #tpu.memory_space<vmem>>, vector<8x4x128xf32>,
    %c0_15 = arith.constant 0 : index
    %c0_16 = arith.constant 0 : index
    %13 = vector.load %arg1[%c0_15, %c0_16] : memref<8x24xf32, #tpu.memory_space<vmem>>, vector<8x24xf32>
    %14 = vector.shape_cast %13 : vector<8x24xf32> to vector<1x8x24xf32>
    %15 = vector.shape_cast %14 : vector<1x8x24xf32> to vector<1x8x24xf32>
    %16 = vector.broadcast %15 : vector<1x8x24xf32> to vector<8x8x24xf32>
    %c0_17 = arith.constant 0 : index
    %c0_18 = arith.constant 0 : index
    %c0_19 = arith.constant 0 : index
    %17 = vector.load %arg6[%c0_17, %c0_18, %c0_19] : memref<8x24x128xf32, #tpu.memory_space<vmem>>, vector<8x24x128xf32>
    "tpu.trace_start"() <{level = 10 : i32, message = "bmk,bkp->bmp"}> : () -> ()
    %cst_20 = arith.constant dense<0.000000e+00> : vector<8x8x128xf32>
    %18 = tpu.matmul %16, %17, %cst_20 {dimension_numbers = #tpu.dot_dimension_numbers<[2], [1], [1], [2], [0, 0, 0, 1, 1, 2], [0], [0]>} : vector<8x8x24xf32>, vector<8x24x128xf32>, vector<8x8x128xf32> -> vector<8x8x128xf32>
    "tpu.trace_stop"() : () -> ()
    %c0_21 = arith.constant 0 : index
    %c0_22 = arith.constant 0 : index
    %19 = vector.load %arg2[%c0_21, %c0_22] : memref<8x1xf32, #tpu.memory_space<vmem>>, vector<8x1xf32>
    %20 = vector.shape_cast %19 : vector<8x1xf32> to vector<1x8x1xf32>
    %21 = vector.broadcast %20 : vector<1x8x1xf32> to vector<8x8x128xf32>
    %22 = arith.addf %18, %21 : vector<8x8x128xf32>
    %cst_23 = arith.constant dense<0xFF800000> : vector<8x128xf32>
    %23 = vector.multi_reduction <maximumf>, %22, %cst_23 [1] : vector<8x8x128xf32> to vector<8x128xf32>
    %24 = vector.shape_cast %23 : vector<8x128xf32> to vector<8x1x128xf32>
    %25 = vector.broadcast %24 : vector<8x1x128xf32> to vector<8x8x128xf32>
    %26 = arith.subf %22, %25 : vector<8x8x128xf32>
    %27 = math.exp %26 : vector<8x8x128xf32>
    %cst_24 = arith.constant dense<0.000000e+00> : vector<8x128xf32>
    %28 = vector.multi_reduction <add>, %27, %cst_24 [1] : vector<8x8x128xf32> to vector<8x128xf32>
    %29 = vector.shape_cast %28 : vector<8x128xf32> to vector<8x1x128xf32>
    %30 = math.log %29 : vector<8x1x128xf32>
    %31 = arith.addf %30, %24 : vector<8x1x128xf32>
    %32 = tpu.iota {dimensions = array<i32: 2>} : vector<8x1x128xi32>
    %c12_i32 = arith.constant 12 : i32
    %33 = vector.broadcast %c12_i32 : i32 to vector<8x1x128xi32>
    %34 = arith.cmpi slt, %32, %33 : vector<8x1x128xi32>
    %cst_25 = arith.constant 0xFF800000 : f32
    %35 = vector.broadcast %cst_25 : f32 to vector<8x1x128xf32>
    %36 = arith.select %34, %31, %35 : vector<8x1x128xi1>, vector<8x1x128xf32>
    %cst_26 = arith.constant dense<0xFF800000> : vector<8x1xf32>
    %37 = vector.multi_reduction <maximumf>, %36, %cst_26 [2] : vector<8x1x128xf32> to vector<8x1xf32>
    %38 = vector.shape_cast %37 : vector<8x1xf32> to vector<8x1x1xf32>
    %39 = vector.broadcast %38 : vector<8x1x1xf32> to vector<8x1x128xf32>
    %40 = arith.subf %36, %39 : vector<8x1x128xf32>
    %41 = math.exp %40 : vector<8x1x128xf32>
    %cst_27 = arith.constant dense<0.000000e+00> : vector<8x1xf32>
    %42 = vector.multi_reduction <add>, %41, %cst_27 [2] : vector<8x1x128xf32> to vector<8x1xf32>
    %43 = vector.shape_cast %42 : vector<8x1xf32> to vector<8x1x1xf32>
    %44 = math.log %43 : vector<8x1x1xf32>
    %45 = arith.addf %44, %38 : vector<8x1x1xf32>
    %46 = vector.shape_cast %45 : vector<8x1x1xf32> to vector<8x1xf32>
    %c0_28 = arith.constant 0 : index
    %47 = memref.load %arg4[%c0_28] : memref<2xf32, #tpu.memory_space<smem>>
    %48 = vector.broadcast %47 : f32 to vector<8x1xf32>
    %49 = arith.mulf %46, %48 : vector<8x1xf32>
    %c1 = arith.constant 1 : index
    %50 = memref.load %arg4[%c1] : memref<2xf32, #tpu.memory_space<smem>>
    %51 = vector.broadcast %50 : f32 to vector<8x1xf32>
    %52 = arith.addf %49, %51 : vector<8x1xf32>
    %53 = vector.shape_cast %52 : vector<8x1xf32> to vector<8x1xf32>
    %54 = vector.broadcast %53 : vector<8x1xf32> to vector<8x128xf32>
    %c0_29 = arith.constant 0 : index
    %c0_30 = arith.constant 0 : index
    %55 = vector.load %arg5[%c0_29, %c0_30] : memref<8x128xf32, #tpu.memory_space<vmem>>, vector<8x128xf32>
    tpu.vector_store %arg5[%c0_29, %c0_30], %54 {strides = array<i32>} : memref<8x128xf32, #tpu.memory_space<vmem>>, vector<8x128xf32>,
    return
  }
  func.func @transform_0(%arg0: i32) -> (i32, i32) {
    %c0_i32 = arith.constant 0 : i32
    %c0_i32_0 = arith.constant 0 : i32
    %c0_i32_1 = arith.constant 0 : i32
    return %c0_i32, %c0_i32_0 : i32, i32
  }
  func.func @transform_1(%arg0: i32) -> (i32, i32) {
    %c0_i32 = arith.constant 0 : i32
    %c0_i32_0 = arith.constant 0 : i32
    %c0_i32_1 = arith.constant 0 : i32
    return %c0_i32, %c0_i32_0 : i32, i32
  }
  func.func @transform_2(%arg0: i32) -> (i32, i32, i32) {
    %c0_i32 = arith.constant 0 : i32
    %c0_i32_0 = arith.constant 0 : i32
    %c0_i32_1 = arith.constant 0 : i32
    return %arg0, %c0_i32, %c0_i32_0 : i32, i32, i32
  }
  func.func @transform_3(%arg0: i32) -> i32 {
    %c0_i32 = arith.constant 0 : i32
    %c0_i32_0 = arith.constant 0 : i32
    return %c0_i32 : i32
  }
  func.func @transform_4(%arg0: i32) -> (i32, i32) {
    %c0_i32 = arith.constant 0 : i32
    %c0_i32_0 = arith.constant 0 : i32
    return %arg0, %c0_i32 : i32, i32
  }
}

</mosaic_0001>

<bundles_post_ra>
// kernel: tpu_custom_call.1
= control target key start
LH: loop header
LB: loop body
LE: loop exit
PB: predicated region body
PF: predicated region fallthrough
CT: control target
= control target key end

     0   :  { %9 = vsyncpa [#allocation4], 0  ;;  %s1600_s0 = inlined_call_operand.vmem [shape: f32[8,24], index: 0, kind: input, shape index: {}]   ;;  %s1601_s1 = inlined_call_operand.vmem [shape: f32[8,1], index: 1, kind: input, shape index: {}]   ;;  %s1602_s2 = inlined_call_operand.hbm [shape: bf16[8,4,128], index: 2, kind: input, shape index: {}]   ;;  %s1603_s3 = inlined_call_operand.vmem [shape: f32[2], index: 3, kind: input, shape index: {}]   ;;  %s1604_s4 = inlined_call_operand.hbm [shape: f32[8,128], index: 4, kind: output, shape index: {}]  }
   0x1   :  { %10 = vsyncpa [#allocation6], 0 }
   0x2   :  { %11 = vsyncpa [#allocation5], 0  ;;  %s1391_s15 = smov [#allocation3]   ;;  %s34_s19 = sshll.u32 %s1603_s3, 4  ;;  %s35_s19 = int_to_ptr.vmem [resolvable:$true] %s34_s19 }
   0x3   :  { %s21_s16 = sshll.u32 %s1391_s15, 4  ;;  %s22_s16 = int_to_ptr.vmem [resolvable:$true] %s21_s16 }
   0x4   :  { %s1341_s20 = scalar_lea.vmem %s22_s16, 256  ;;  %p1346_p1 = scmp.lt.s32.totalorder %s22_s16, %s22_s16 }
   0x5   :  { %p1342_p0 = scmp.ne.s32.totalorder %s22_s16, %s1341_s20  ;;  %p1347_p2 = scmp.lt.s32.totalorder %s1341_s20, %s1341_s20 }
   0x7   :  { %p1348_p3 = por %p1347_p2, %p1346_p1 }
   0x9   :  { %p1349_p4 = pnand %p1348_p3, %p1342_p0 }
   0xb   :  { %1352 = shalt.err (!%p1349_p4)
}
   0xc   :  { %s1392_s21 = smov 32   ;;  %s1393_s22 = smov 2  }
   0xd   :  { %27 = dma.hbm_to_vmem [thread:$0]  %s1602_s2, 256, %s22_s16, [#allocation4], %s1392_s21, %s1392_s21, %s1393_s22  }
   0xe   :  { %s1353_s25 = scalar_lea.vmem %s35_s19, 16  ;;  %p1358_p6 = scmp.lt.s32.totalorder %s35_s19, %s35_s19 }
   0xf   :  { %p1354_p5 = scmp.ne.s32.totalorder %s35_s19, %s1353_s25  ;;  %p1359_p7 = scmp.lt.s32.totalorder %s1353_s25, %s1353_s25 }
  0x11   :  { %p1360_p8 = por %p1359_p7, %p1358_p6 }
  0x13   :  { %p1361_p9 = pnand %p1360_p8, %p1354_p5 }
  0x15   :  { %1364 = shalt.err (!%p1361_p9)
}
  0x16   :  { %s1394_s3 = smov [#allocation7]  }
  0x17   :  { %37 = dma.vmem_to_smem %s35_s19, 16, %s1394_s3, [#allocation6]  }
  0x18   :  { %1385 = dma.done.wait [#allocation4], 256  }
  0x19   :  { %1386 = vsyncadd [#allocation4], 4294967040 }
  0x1a   :  { %1387 = dma.done.wait [#allocation6], 16  }
  0x1b   :  { %1388 = vsyncadd [#allocation6], 4294967280 }
  0x1c   :  { %44 = sfence }
  0x1d   :  { %v45_v0 = vld [vmem:[#allocation3] sm:$0x3]  ;;  %v46_v1 = vld [vmem:[#allocation3 + $0x2] sm:$0x3]  ;;  %v47_v4 = vld [vmem:[#allocation3 + $0x4] sm:$0x3] }
  0x1e   :  { %v53_v2 = vunpack.c.l.bf16 %v45_v0  ;;  %v54_v3 = vunpack.c.l.bf16 %v46_v1  ;;  %v48_v5 = vld [vmem:[#allocation3 + $0x6] sm:$0x3]  ;;  %v55_v6 = vunpack.c.l.bf16 %v47_v4  ;;  %v49_v8 = vld [vmem:[#allocation3 + $0x8] sm:$0x3]  ;;  %v50_v9 = vld [vmem:[#allocation3 + $0xa] sm:$0x3] }
  0x1f   :  { %v56_v7 = vunpack.c.l.bf16 %v48_v5  ;;  %v51_v10 = vld [vmem:[#allocation3 + $0xc] sm:$0x3]  ;;  %v52_v12 = vld [vmem:[#allocation3 + $0xe] sm:$0x3]  ;;  %s1395_s2 = smov 124   ;;  %s1396_s26 = smov 125   ;;  %v57_v13 = vunpack.c.l.bf16 %v49_v8  ;;  %v58_v14 = vunpack.c.l.bf16 %v50_v9 }
  0x20   :  { %70 = vst [vmem:[#allocation2 + $0x18] sm:$0xf] %v54_v3  ;;  %v1188_v11 = vpack.i.bf16 %v54_v3, %v53_v2  ;;  %69 = vst [vmem:[#allocation2] sm:$0xf] %v53_v2  ;;  %v59_v15 = vunpack.c.l.bf16 %v51_v10  ;;  %v60_v16 = vunpack.c.l.bf16 %v52_v12  ;;  %v1397_v17 = vmov 0.0   ;;  %s1398_s27 = smov 126  }
  0x21   :  { %72 = vst [vmem:[#allocation2 + $0x48] sm:$0xf] %v56_v7  ;;  %71 = vst [vmem:[#allocation2 + $0x30] sm:$0xf] %v55_v6  ;;  %1104 = vmatprep.subr.mxu0 %v1397_v17  ;;  %1113 = vmatprep.subr.mxu1 %v1397_v17  ;;  %s1399_s28 = smov 127   ;;  %v1208_v18 = vpack.i.bf16 %v56_v7, %v55_v6  ;;  %vm1400_vm0 = vmmov 0   ;;  %v1228_v19 = vpack.i.bf16 %v58_v14, %v57_v13 }
  0x22   :  { %1189 = vrot.lane.b32.xlu0 %v1188_v11, %s1395_s2  ;;  %1199 = vrot.lane.b32.xlu1 %v1188_v11, %s1396_s26  ;;  %74 = vst [vmem:[#allocation2 + $0x78] sm:$0xf] %v58_v14  ;;  %73 = vst [vmem:[#allocation2 + $0x60] sm:$0xf] %v57_v13  ;;  %v1248_v20 = vpack.i.bf16 %v60_v16, %v59_v15  ;;  %v1401_v21 = vmov 0   ;;  %v198_v22 = vld [vmem:[%s1601_s1] sm:$0xff] }
  0x23   :  { %76 = vst [vmem:[#allocation2 + $0xa8] sm:$0xf] %v60_v16  ;;  %75 = vst [vmem:[#allocation2 + $0x90] sm:$0xf] %v59_v15  ;;  %1110 = vmatprep.mubr.msk.f32.mxu0 %vm1400_vm0, %v1397_v17  ;;  %1119 = vmatprep.mubr.msk.f32.mxu1 %vm1400_vm0, %v1397_v17  ;;  %v1464_v53 = vld [vmem:[%s1600_s0] sm:$0xff]  ;;  %vm204_vm1 = vcmask 195584  }
  0x24   :  { %61 = vst [vmem:[#allocation2 + $0x14] sm:$0xf] %v1397_v17  ;;  %62 = vst [vmem:[#allocation2 + $0x2c] sm:$0xf] %v1397_v17  ;;  %1268 = vset.pattern.permute.xlu0 %v1401_v21  ;;  %s1003_s0 = sld [smem:[#allocation7]]  ;;  %vm1031_vm3 = vcmask 1041409  }
  0x25   :  { %63 = vst [vmem:[#allocation2 + $0x44] sm:$0xf] %v1397_v17  ;;  %64 = vst [vmem:[#allocation2 + $0x5c] sm:$0xf] %v1397_v17  ;;  %s1071_s6 = sld [smem:[#allocation7 + $0x1]]  ;;  %vm1033_vm4 = vcmask 1042434  }
  0x26   :  { %65 = vst [vmem:[#allocation2 + $0x74] sm:$0xf] %v1397_v17  ;;  %66 = vst [vmem:[#allocation2 + $0x8c] sm:$0xf] %v1397_v17  ;;  %1194 = vrot.lane.b32.xlu0 %v1188_v11, %s1398_s27  ;;  %1204 = vrot.lane.b32.xlu1 %v1188_v11, %s1399_s28  ;;  %vm1035_vm5 = vcmask 1043459   ;;  %vm1037_vm6 = vcmask 1044484  }
  0x27   :  { %67 = vst [vmem:[#allocation2 + $0xa4] sm:$0xf] %v1397_v17  ;;  %68 = vst [vmem:[#allocation2 + $0xbc] sm:$0xf] %v1397_v17  ;;  %vm1039_vm7 = vcmask 1045509   ;;  %vm1041_vm8 = vcmask 1046534  }
  0x28   :  { %s1402_s7 = smov [#allocation8]   ;;  %vm1043_vm9 = vcmask 1047559  }
  0x29   :  { %s1053_s8 = sshll.u32 %s1402_s7, 4  ;;  %s1054_s8 = int_to_ptr.vmem [resolvable:$true] %s1053_s8 }
  0x2a   :  { %1209 = vrot.lane.b32.xlu0 %v1208_v18, %s1395_s2  ;;  %1214 = vrot.lane.b32.xlu1 %v1208_v18, %s1398_s27  ;;  %s1365_s9 = scalar_lea.vmem %s1054_s8, 128  ;;  %p1370_p11 = scmp.lt.s32.totalorder %s1054_s8, %s1054_s8 }
  0x2b   :  { %p1366_p10 = scmp.ne.s32.totalorder %s1054_s8, %s1365_s9  ;;  %p1371_p12 = scmp.lt.s32.totalorder %s1365_s9, %s1365_s9 }
  0x2d   :  { %p1372_p13 = por %p1371_p12, %p1370_p11 }
  0x2e   :  { %1219 = vrot.lane.b32.xlu0 %v1208_v18, %s1396_s26  ;;  %1224 = vrot.lane.b32.xlu1 %v1208_v18, %s1399_s28 }
  0x2f   :  { %p1373_p0 = pnand %p1372_p13, %p1366_p10 }
  0x32   :  { %1229 = vrot.lane.b32.xlu0 %v1228_v19, %s1395_s2  ;;  %1234 = vrot.lane.b32.xlu1 %v1228_v19, %s1398_s27 }
  0x36   :  { %1239 = vrot.lane.b32.xlu0 %v1228_v19, %s1396_s26  ;;  %1244 = vrot.lane.b32.xlu1 %v1228_v19, %s1399_s28 }
  0x3a   :  { %1249 = vrot.lane.b32.xlu0 %v1248_v20, %s1395_s2  ;;  %1254 = vrot.lane.b32.xlu1 %v1248_v20, %s1398_s27 }
  0x3e   :  { %1259 = vrot.lane.b32.xlu0 %v1248_v20, %s1396_s26  ;;  %1264 = vrot.lane.b32.xlu1 %v1248_v20, %s1399_s28 }
  0x42   :  { %201 = vperm.xlu0 %1268, %v198_v22  }
  0x94   :  { %v1190_v23 = vpop.permute.xlu0 %1189  ;;  %v1200_v24 = vpop.permute.xlu1 %1199 }
  0x95   :  { %v1192_v25 = vunpack.i.h.bf16 %v1190_v23  ;;  %v1191_v26 = vunpack.i.l.bf16 %v1190_v23  ;;  %v1202_v27 = vunpack.i.h.bf16 %v1200_v24  ;;  %v1201_v28 = vunpack.i.l.bf16 %v1200_v24 }
  0x97   :  { %166 = vst [vmem:[#allocation2 + $0x28] sm:$0xf] %v1192_v25  ;;  %165 = vst [vmem:[#allocation2 + $0x10] sm:$0xf] %v1191_v26 }
  0x98   :  { %142 = vst [vmem:[#allocation2 + $0x24] sm:$0xf] %v1202_v27  ;;  %141 = vst [vmem:[#allocation2 + $0xc] sm:$0xf] %v1201_v28  ;;  %v1195_v29 = vpop.permute.xlu0 %1194  ;;  %v1205_v30 = vpop.permute.xlu1 %1204 }
  0x99   :  { %v1197_v31 = vunpack.i.h.bf16 %v1195_v29  ;;  %v1196_v32 = vunpack.i.l.bf16 %v1195_v29  ;;  %v1207_v33 = vunpack.i.h.bf16 %v1205_v30  ;;  %v1206_v34 = vunpack.i.l.bf16 %v1205_v30 }
  0x9b   :  { %118 = vst [vmem:[#allocation2 + $0x20] sm:$0xf] %v1197_v31  ;;  %117 = vst [vmem:[#allocation2 + $0x8] sm:$0xf] %v1196_v32 }
  0x9c   :  { %94 = vst [vmem:[#allocation2 + $0x1c] sm:$0xf] %v1207_v33  ;;  %93 = vst [vmem:[#allocation2 + $0x4] sm:$0xf] %v1206_v34  ;;  %v1210_v35 = vpop.permute.xlu0 %1209  ;;  %v1215_v36 = vpop.permute.xlu1 %1214 }
  0x9d   :  { %v1212_v37 = vunpack.i.h.bf16 %v1210_v35  ;;  %v1211_v38 = vunpack.i.l.bf16 %v1210_v35  ;;  %v1217_v39 = vunpack.i.h.bf16 %v1215_v36  ;;  %v1216_v40 = vunpack.i.l.bf16 %v1215_v36 }
  0x9e   :  { %v176_v41 = vld [vmem:[#allocation2 + $0x10] sm:$0xff]  ;;  %v179_v42 = vld [vmem:[#allocation2 + $0x28] sm:$0xff] }
  0x9f   :  { %168 = vst [vmem:[#allocation2 + $0x58] sm:$0xf] %v1212_v37  ;;  %167 = vst [vmem:[#allocation2 + $0x40] sm:$0xf] %v1211_v38  ;;  %1105 = vmatpush3.msra.mxu0 %v176_v41  ;;  %1114 = vmatpush3.msra.mxu1 %v179_v42 }
  0xa0   :  { %120 = vst [vmem:[#allocation2 + $0x50] sm:$0xf] %v1217_v39  ;;  %119 = vst [vmem:[#allocation2 + $0x38] sm:$0xf] %v1216_v40  ;;  %v1220_v43 = vpop.permute.xlu0 %1219  ;;  %v1225_v44 = vpop.permute.xlu1 %1224  ;;  %1106 = vmatprep.subr.mxu0 %v1397_v17  ;;  %1115 = vmatprep.subr.mxu1 %v1397_v17 }
  0xa1   :  { %v1222_v45 = vunpack.i.h.bf16 %v1220_v43  ;;  %v1221_v46 = vunpack.i.l.bf16 %v1220_v43  ;;  %v1227_v47 = vunpack.i.h.bf16 %v1225_v44  ;;  %v1226_v48 = vunpack.i.l.bf16 %v1225_v44 }
  0xa2   :  { %v175_v49 = vld [vmem:[#allocation2 + $0x8] sm:$0xff]  ;;  %v178_v50 = vld [vmem:[#allocation2 + $0x20] sm:$0xff] }
  0xa3   :  { %v174_v51 = vld [vmem:[#allocation2] sm:$0xff]  ;;  %144 = vst [vmem:[#allocation2 + $0x54] sm:$0xf] %v1222_v45  ;;  %143 = vst [vmem:[#allocation2 + $0x3c] sm:$0xf] %v1221_v46  ;;  %1107 = vmatpush3.msra.mxu0 %v175_v49  ;;  %1116 = vmatpush3.msra.mxu1 %v178_v50  ;;  %v177_v52 = vld [vmem:[#allocation2 + $0x18] sm:$0xff] }
  0xa4   :  { %96 = vst [vmem:[#allocation2 + $0x4c] sm:$0xf] %v1227_v47  ;;  %95 = vst [vmem:[#allocation2 + $0x34] sm:$0xf] %v1226_v48  ;;  %v1230_v54 = vpop.permute.xlu0 %1229  ;;  %1108 = vmatprep.subr.mxu0 %v1397_v17  ;;  %1117 = vmatprep.subr.mxu1 %v1397_v17  ;;  %v1235_v55 = vpop.permute.xlu1 %1234 }
  0xa5   :  { %v1232_v56 = vunpack.i.h.bf16 %v1230_v54  ;;  %v1231_v57 = vunpack.i.l.bf16 %v1230_v54  ;;  %1109 = vmatpush3.msra.mxu0 %v174_v51  ;;  %1118 = vmatpush3.msra.mxu1 %v177_v52  ;;  %v1237_v58 = vunpack.i.h.bf16 %v1235_v55  ;;  %v1236_v59 = vunpack.i.l.bf16 %v1235_v55 }
  0xa6   :  { %1111 = vmatmul.mubr.msk.f32.vlgmr.msra.gmra.mxu0 %vm204_vm1, %v1464_v53  ;;  %1120 = vmatmul.mubr.msk.f32.vlgmr.msra.gmra.mxu1 %vm204_vm1, %v1464_v53  ;;  %v182_v60 = vld [vmem:[#allocation2 + $0x40] sm:$0xff]  ;;  %v185_v61 = vld [vmem:[#allocation2 + $0x58] sm:$0xff] }
  0xa7   :  { %170 = vst [vmem:[#allocation2 + $0x88] sm:$0xf] %v1232_v56  ;;  %169 = vst [vmem:[#allocation2 + $0x70] sm:$0xf] %v1231_v57  ;;  %1122 = vmatprep.subr.mxu0 %v1397_v17  ;;  %1131 = vmatprep.subr.mxu1 %v1397_v17 }
  0xa8   :  { %122 = vst [vmem:[#allocation2 + $0x80] sm:$0xf] %v1237_v58  ;;  %121 = vst [vmem:[#allocation2 + $0x68] sm:$0xf] %v1236_v59  ;;  %1123 = vmatpush3.msra.mxu0 %v182_v60  ;;  %1132 = vmatpush3.msra.mxu1 %v185_v61  ;;  %v1240_v62 = vpop.permute.xlu0 %1239  ;;  %v1245_v63 = vpop.permute.xlu1 %1244 }
  0xa9   :  { %v1242_v0 = vunpack.i.h.bf16 %v1240_v62  ;;  %v1241_v1 = vunpack.i.l.bf16 %v1240_v62  ;;  %v1247_v2 = vunpack.i.h.bf16 %v1245_v63  ;;  %v1246_v3 = vunpack.i.l.bf16 %v1245_v63  ;;  %1124 = vmatprep.subr.mxu0 %v1397_v17  ;;  %1133 = vmatprep.subr.mxu1 %v1397_v17 }
  0xaa   :  { %v181_v4 = vld [vmem:[#allocation2 + $0x38] sm:$0xff]  ;;  %v184_v5 = vld [vmem:[#allocation2 + $0x50] sm:$0xff]  ;;  %1128 = vmatprep.mubr.msk.f32.mxu0 %vm1400_vm0, %v1397_v17  ;;  %1137 = vmatprep.mubr.msk.f32.mxu1 %vm1400_vm0, %v1397_v17 }
  0xab   :  { %v180_v6 = vld [vmem:[#allocation2 + $0x30] sm:$0xff]  ;;  %146 = vst [vmem:[#allocation2 + $0x84] sm:$0xf] %v1242_v0  ;;  %145 = vst [vmem:[#allocation2 + $0x6c] sm:$0xf] %v1241_v1  ;;  %1125 = vmatpush3.msra.mxu0 %v181_v4  ;;  %1134 = vmatpush3.msra.mxu1 %v184_v5  ;;  %v183_v7 = vld [vmem:[#allocation2 + $0x48] sm:$0xff] }
  0xac   :  { %98 = vst [vmem:[#allocation2 + $0x7c] sm:$0xf] %v1247_v2  ;;  %97 = vst [vmem:[#allocation2 + $0x64] sm:$0xf] %v1246_v3  ;;  %v1250_v8 = vpop.permute.xlu0 %1249  ;;  %1126 = vmatprep.subr.mxu0 %v1397_v17  ;;  %1135 = vmatprep.subr.mxu1 %v1397_v17  ;;  %v1255_v9 = vpop.permute.xlu1 %1254 }
  0xad   :  { %v1252_v10 = vunpack.i.h.bf16 %v1250_v8  ;;  %v1251_v11 = vunpack.i.l.bf16 %v1250_v8  ;;  %1127 = vmatpush3.msra.mxu0 %v180_v6  ;;  %1136 = vmatpush3.msra.mxu1 %v183_v7  ;;  %v1257_v12 = vunpack.i.h.bf16 %v1255_v9  ;;  %v1256_v13 = vunpack.i.l.bf16 %v1255_v9 }
  0xae   :  { %1129 = vmatmul.mubr.msk.f32.vlgmr.msra.gmra.mxu0 %vm204_vm1, %v1464_v53  ;;  %1138 = vmatmul.mubr.msk.f32.vlgmr.msra.gmra.mxu1 %vm204_vm1, %v1464_v53  ;;  %v188_v14 = vld [vmem:[#allocation2 + $0x70] sm:$0xff]  ;;  %v191_v15 = vld [vmem:[#allocation2 + $0x88] sm:$0xff] }
  0xaf   :  { %172 = vst [vmem:[#allocation2 + $0xb8] sm:$0xf] %v1252_v10  ;;  %171 = vst [vmem:[#allocation2 + $0xa0] sm:$0xf] %v1251_v11  ;;  %1140 = vmatprep.subr.mxu0 %v1397_v17  ;;  %1149 = vmatprep.subr.mxu1 %v1397_v17 }
  0xb0   :  { %124 = vst [vmem:[#allocation2 + $0xb0] sm:$0xf] %v1257_v12  ;;  %123 = vst [vmem:[#allocation2 + $0x98] sm:$0xf] %v1256_v13  ;;  %1141 = vmatpush3.msra.mxu0 %v188_v14  ;;  %1150 = vmatpush3.msra.mxu1 %v191_v15  ;;  %v1260_v16 = vpop.permute.xlu0 %1259  ;;  %v1265_v18 = vpop.permute.xlu1 %1264 }
  0xb1   :  { %v1262_v19 = vunpack.i.h.bf16 %v1260_v16  ;;  %v1261_v20 = vunpack.i.l.bf16 %v1260_v16  ;;  %v1267_v21 = vunpack.i.h.bf16 %v1265_v18  ;;  %v1266_v22 = vunpack.i.l.bf16 %v1265_v18  ;;  %1142 = vmatprep.subr.mxu0 %v1397_v17  ;;  %1151 = vmatprep.subr.mxu1 %v1397_v17 }
  0xb2   :  { %v187_v23 = vld [vmem:[#allocation2 + $0x68] sm:$0xff]  ;;  %v190_v24 = vld [vmem:[#allocation2 + $0x80] sm:$0xff]  ;;  %1146 = vmatprep.mubr.msk.f32.mxu0 %vm1400_vm0, %v1397_v17  ;;  %1155 = vmatprep.mubr.msk.f32.mxu1 %vm1400_vm0, %v1397_v17 }
  0xb3   :  { %v186_v25 = vld [vmem:[#allocation2 + $0x60] sm:$0xff]  ;;  %148 = vst [vmem:[#allocation2 + $0xb4] sm:$0xf] %v1262_v19  ;;  %147 = vst [vmem:[#allocation2 + $0x9c] sm:$0xf] %v1261_v20  ;;  %1143 = vmatpush3.msra.mxu0 %v187_v23  ;;  %1152 = vmatpush3.msra.mxu1 %v190_v24  ;;  %v189_v26 = vld [vmem:[#allocation2 + $0x78] sm:$0xff] }
  0xb4   :  { %100 = vst [vmem:[#allocation2 + $0xac] sm:$0xf] %v1267_v21  ;;  %99 = vst [vmem:[#allocation2 + $0x94] sm:$0xf] %v1266_v22  ;;  %1144 = vmatprep.subr.mxu0 %v1397_v17  ;;  %1153 = vmatprep.subr.mxu1 %v1397_v17 }
  0xb5   :  { %1145 = vmatpush3.msra.mxu0 %v186_v25  ;;  %1154 = vmatpush3.msra.mxu1 %v189_v26 }
  0xb6   :  { %1147 = vmatmul.mubr.msk.f32.vlgmr.msra.gmra.mxu0 %vm204_vm1, %v1464_v53  ;;  %1156 = vmatmul.mubr.msk.f32.vlgmr.msra.gmra.mxu1 %vm204_vm1, %v1464_v53  ;;  %v194_v27 = vld [vmem:[#allocation2 + $0xa0] sm:$0xff]  ;;  %v197_v28 = vld [vmem:[#allocation2 + $0xb8] sm:$0xff] }
  0xb7   :  { %1158 = vmatprep.subr.mxu0 %v1397_v17  ;;  %1167 = vmatprep.subr.mxu1 %v1397_v17 }
  0xb8   :  { %1159 = vmatpush3.msra.mxu0 %v194_v27  ;;  %1168 = vmatpush3.msra.mxu1 %v197_v28 }
  0xb9   :  { %1160 = vmatprep.subr.mxu0 %v1397_v17  ;;  %1169 = vmatprep.subr.mxu1 %v1397_v17 }
  0xba   :  { %v193_v29 = vld [vmem:[#allocation2 + $0x98] sm:$0xff]  ;;  %v196_v30 = vld [vmem:[#allocation2 + $0xb0] sm:$0xff]  ;;  %1164 = vmatprep.mubr.msk.f32.mxu0 %vm1400_vm0, %v1397_v17  ;;  %1173 = vmatprep.mubr.msk.f32.mxu1 %vm1400_vm0, %v1397_v17 }
  0xbb   :  { %v192_v31 = vld [vmem:[#allocation2 + $0x90] sm:$0xff]  ;;  %1161 = vmatpush3.msra.mxu0 %v193_v29  ;;  %1170 = vmatpush3.msra.mxu1 %v196_v30  ;;  %v195_v32 = vld [vmem:[#allocation2 + $0xa8] sm:$0xff] }
  0xbc   :  { %1162 = vmatprep.subr.mxu0 %v1397_v17  ;;  %1171 = vmatprep.subr.mxu1 %v1397_v17 }
  0xbd   :  { %1163 = vmatpush3.msra.mxu0 %v192_v31  ;;  %1172 = vmatpush3.msra.mxu1 %v195_v32  ;;  %v202_v33 = vpop.permute.xlu0 %201 }
  0xbe   :  { %1165 = vmatmul.mubr.msk.f32.vlgmr.msra.gmra.mxu0 %vm204_vm1, %v1464_v53  ;;  %1174 = vmatmul.mubr.msk.f32.vlgmr.msra.gmra.mxu1 %vm204_vm1, %v1464_v53 }
 0x166   :  { %v274_v34 = vpop.f32.mrf.mxu0  ;;  %v344_v35 = vpop.f32.mrf.mxu1 }
 0x167   :  { %v275_v36 = vadd.f32 %v274_v34, %v202_v33  ;;  %v345_v37 = vadd.f32 %v344_v35, %v202_v33 }
 0x168   :  { %v1112_v38 = vpop.f32.mrf.mxu0  ;;  %v1121_v39 = vpop.f32.mrf.mxu1 }
 0x169   :  { %v768_v40 = vrot.slane %v275_v36, 4  ;;  %v774_v41 = vrot.slane %v345_v37, 4 }
 0x16b   :  { %v769_v42 = vmax.f32 %v275_v36, %v768_v40  ;;  %v775_v43 = vmax.f32 %v345_v37, %v774_v41 }
 0x16d   :  { %v770_v17 = vrot.slane %v769_v42, 2  ;;  %v776_v44 = vrot.slane %v775_v43, 2 }
 0x16e   :  { %v414_v45 = vpop.f32.mrf.mxu0  ;;  %v484_v46 = vpop.f32.mrf.mxu1 }
 0x16f   :  { %v415_v47 = vadd.f32 %v414_v45, %v202_v33  ;;  %v485_v48 = vadd.f32 %v484_v46, %v202_v33  ;;  %v777_v49 = vmax.f32 %v775_v43, %v776_v44  ;;  %v771_v50 = vmax.f32 %v769_v42, %v770_v17 }
 0x170   :  { %v1130_v51 = vpop.f32.mrf.mxu0  ;;  %v1139_v52 = vpop.f32.mrf.mxu1 }
 0x171   :  { %v780_v53 = vrot.slane %v415_v47, 4  ;;  %v786_v54 = vrot.slane %v485_v48, 4  ;;  %v778_v55 = vrot.slane %v777_v49, 1  ;;  %v772_v56 = vrot.slane %v771_v50, 1 }
 0x173   :  { %v781_v57 = vmax.f32 %v415_v47, %v780_v53  ;;  %v787_v58 = vmax.f32 %v485_v48, %v786_v54  ;;  %v1514_v59 = vmax.f32 %v777_v49, %v778_v55  ;;  %v1516_v60 = vmax.f32 %v771_v50, %v772_v56 }
 0x175   :  { %v782_v61 = vrot.slane %v781_v57, 2  ;;  %v788_v62 = vrot.slane %v787_v58, 2  ;;  %v817_v63 = vsub.f32 %v345_v37, %v1514_v59  ;;  %v816_v0 = vsub.f32 %v275_v36, %v1516_v60 }
 0x176   :  { %v554_v1 = vpop.f32.mrf.mxu0  ;;  %v624_v2 = vpop.f32.mrf.mxu1 }
 0x177   :  { %v555_v3 = vadd.f32 %v554_v1, %v202_v33  ;;  %v625_v4 = vadd.f32 %v624_v2, %v202_v33  ;;  %v826_v5 = vmul.f32 1.442695, %v817_v63  ;;  %v824_v6 = vmul.f32 1.442695, %v816_v0 }
 0x178   :  { %v1148_v7 = vpop.f32.mrf.mxu0  ;;  %v1157_v8 = vpop.f32.mrf.mxu1  ;;  %v789_v9 = vmax.f32 %v787_v58, %v788_v62  ;;  %v783_v10 = vmax.f32 %v781_v57, %v782_v61 }
 0x179   :  { %v792_v11 = vrot.slane %v555_v3, 4  ;;  %v798_v12 = vrot.slane %v625_v4, 4  ;;  %1269 = vpow2.f32 %v826_v5 }
 0x17a   :  { %1271 = vpow2.f32 %v824_v6  ;;  %v790_v13 = vrot.slane %v789_v9, 1  ;;  %v784_v14 = vrot.slane %v783_v10, 1 }
 0x17b   :  { %v793_v15 = vmax.f32 %v555_v3, %v792_v11  ;;  %v799_v16 = vmax.f32 %v625_v4, %v798_v12 }
 0x17c   :  { %v1520_v18 = vmax.f32 %v789_v9, %v790_v13  ;;  %v1522_v19 = vmax.f32 %v783_v10, %v784_v14 }
 0x17d   :  { %v794_v20 = vrot.slane %v793_v15, 2  ;;  %v800_v21 = vrot.slane %v799_v16, 2 }
 0x17e   :  { %v694_v22 = vpop.f32.mrf.mxu0  ;;  %v764_v23 = vpop.f32.mrf.mxu1  ;;  %v819_v24 = vsub.f32 %v485_v48, %v1520_v18  ;;  %v818_v25 = vsub.f32 %v415_v47, %v1522_v19 }
 0x17f   :  { %v695_v26 = vadd.f32 %v694_v22, %v202_v33  ;;  %v765_v27 = vadd.f32 %v764_v23, %v202_v33  ;;  %v801_v28 = vmax.f32 %v799_v16, %v800_v21  ;;  %v795_v29 = vmax.f32 %v793_v15, %v794_v20 }
 0x180   :  { %v1166_v30 = vpop.f32.mrf.mxu0  ;;  %v1175_v31 = vpop.f32.mrf.mxu1  ;;  %v830_v32 = vmul.f32 1.442695, %v819_v24  ;;  %v828_v34 = vmul.f32 1.442695, %v818_v25 }
 0x181   :  { %v804_v35 = vrot.slane %v695_v26, 4  ;;  %v810_v36 = vrot.slane %v765_v27, 4  ;;  %v802_v37 = vrot.slane %v801_v28, 1  ;;  %v796_v38 = vrot.slane %v795_v29, 1 }
 0x182   :  { %1273 = vpow2.f32 %v830_v32 }
 0x183   :  { %v805_v39 = vmax.f32 %v695_v26, %v804_v35  ;;  %v811_v40 = vmax.f32 %v765_v27, %v810_v36  ;;  %1275 = vpow2.f32 %v828_v34  ;;  %v1526_v41 = vmax.f32 %v801_v28, %v802_v37 }
 0x184   :  { %v1528_v42 = vmax.f32 %v795_v29, %v796_v38  ;;  %v912_v29 = vlaneseq }
 0x185   :  { %v806_v43 = vrot.slane %v805_v39, 2  ;;  %v812_v33 = vrot.slane %v811_v40, 2  ;;  %v821_v17 = vsub.f32 %v625_v4, %v1526_v41 }
 0x186   :  { %v1270_v44 = vpop.eup %1269  ;;  %v820_v45 = vsub.f32 %v555_v3, %v1528_v42  ;;  %v1538_v38 = vand.u32 127, %v912_v29 }
 0x187   :  { %v1272_v46 = vpop.eup %1271  ;;  %v846_v47 = vrot.slane %v1270_v44, 4  ;;  %v834_v48 = vmul.f32 1.442695, %v821_v17  ;;  %v813_v49 = vmax.f32 %v811_v40, %v812_v33  ;;  %v807_v50 = vmax.f32 %v805_v39, %v806_v43 }
 0x188   :  { %v840_v51 = vrot.slane %v1272_v46, 4  ;;  %v832_v52 = vmul.f32 1.442695, %v820_v45  ;;  %vm914_vm2 = vcmp.lt.s32.totalorder %v1538_v38, 12 }
 0x189   :  { %v847_v53 = vadd.f32 %v1270_v44, %v846_v47  ;;  %1277 = vpow2.f32 %v834_v48  ;;  %v814_v54 = vrot.slane %v813_v49, 1  ;;  %v808_v55 = vrot.slane %v807_v50, 1 }
 0x18a   :  { %v841_v56 = vadd.f32 %v1272_v46, %v840_v51  ;;  %1279 = vpow2.f32 %v832_v52 }
 0x18b   :  { %v848_v57 = vrot.slane %v847_v53, 2  ;;  %v1532_v58 = vmax.f32 %v813_v49, %v814_v54  ;;  %v1534_v61 = vmax.f32 %v807_v50, %v808_v55 }
 0x18c   :  { %v842_v62 = vrot.slane %v841_v56, 2 }
 0x18d   :  { %v849_v63 = vadd.f32 %v848_v57, %v847_v53  ;;  %v823_v0 = vsub.f32 %v765_v27, %v1532_v58  ;;  %v822_v1 = vsub.f32 %v695_v26, %v1534_v61 }
 0x18e   :  { %v843_v2 = vadd.f32 %v842_v62, %v841_v56 }
 0x18f   :  { %v1274_v3 = vpop.eup %1273  ;;  %v850_v4 = vrot.slane %v849_v63, 1  ;;  %v838_v5 = vmul.f32 1.442695, %v823_v0  ;;  %v836_v6 = vmul.f32 1.442695, %v822_v1 }
 0x190   :  { %v1276_v7 = vpop.eup %1275  ;;  %v844_v8 = vrot.slane %v843_v2, 1  ;;  %v858_v9 = vrot.slane %v1274_v3, 4 }
 0x191   :  { %v851_v10 = vadd.f32 %v850_v4, %v849_v63  ;;  %v852_v11 = vrot.slane %v1276_v7, 4  ;;  %1281 = vpow2.f32 %v838_v5 }
 0x192   :  { %v845_v12 = vadd.f32 %v844_v8, %v843_v2  ;;  %v859_v13 = vadd.f32 %v1274_v3, %v858_v9  ;;  %1283 = vpow2.f32 %v836_v6 }
 0x193   :  { %1285 = vlog2.f32 %v851_v10  ;;  %v853_v14 = vadd.f32 %v1276_v7, %v852_v11 }
 0x194   :  { %1287 = vlog2.f32 %v845_v12  ;;  %v860_v15 = vrot.slane %v859_v13, 2 }
 0x195   :  { %v854_v16 = vrot.slane %v853_v14, 2 }
 0x196   :  { %v1278_v20 = vpop.eup %1277  ;;  %v861_v21 = vadd.f32 %v860_v15, %v859_v13 }
 0x197   :  { %v1280_v22 = vpop.eup %1279  ;;  %v855_v23 = vadd.f32 %v854_v16, %v853_v14  ;;  %v870_v24 = vrot.slane %v1278_v20, 4 }
 0x198   :  { %v862_v25 = vrot.slane %v861_v21, 1  ;;  %v864_v26 = vrot.slane %v1280_v22, 4 }
 0x199   :  { %v856_v27 = vrot.slane %v855_v23, 1  ;;  %v871_v28 = vadd.f32 %v1278_v20, %v870_v24 }
 0x19a   :  { %v863_v30 = vadd.f32 %v862_v25, %v861_v21  ;;  %v865_v31 = vadd.f32 %v1280_v22, %v864_v26 }
 0x19b   :  { %v857_v32 = vadd.f32 %v856_v27, %v855_v23  ;;  %v872_v34 = vrot.slane %v871_v28, 2 }
 0x19c   :  { %1289 = vlog2.f32 %v863_v30  ;;  %v866_v35 = vrot.slane %v865_v31, 2 }
 0x19d   :  { %1291 = vlog2.f32 %v857_v32  ;;  %v873_v36 = vadd.f32 %v872_v34, %v871_v28 }
 0x19e   :  { %v1282_v37 = vpop.eup %1281  ;;  %v867_v39 = vadd.f32 %v866_v35, %v865_v31 }
 0x19f   :  { %v1284_v40 = vpop.eup %1283  ;;  %v874_v43 = vrot.slane %v873_v36, 1  ;;  %v882_v33 = vrot.slane %v1282_v37, 4 }
 0x1a0   :  { %v1286_v17 = vpop.eup %1285  ;;  %v868_v44 = vrot.slane %v867_v39, 1  ;;  %v876_v45 = vrot.slane %v1284_v40, 4 }
 0x1a1   :  { %v1288_v46 = vpop.eup %1287  ;;  %v891_v47 = vmul.f32 0.6931472, %v1286_v17  ;;  %v875_v48 = vadd.f32 %v874_v43, %v873_v36  ;;  %v883_v49 = vadd.f32 %v1282_v37, %v882_v33 }
 0x1a2   :  { %v889_v50 = vmul.f32 0.6931472, %v1288_v46  ;;  %v869_v51 = vadd.f32 %v868_v44, %v867_v39  ;;  %v877_v52 = vadd.f32 %v1284_v40, %v876_v45 }
 0x1a3   :  { %v905_v53 = vadd.f32 %v891_v47, %v1514_v59  ;;  %1293 = vlog2.f32 %v875_v48  ;;  %v884_v54 = vrot.slane %v883_v49, 2 }
 0x1a4   :  { %v904_v55 = vadd.f32 %v889_v50, %v1516_v60  ;;  %1295 = vlog2.f32 %v869_v51  ;;  %v878_v56 = vrot.slane %v877_v52, 2 }
 0x1a5   :  { %v916_v57 = vsel %vm914_vm2, %v905_v53, -inf  ;;  %v885_v62 = vadd.f32 %v884_v54, %v883_v49 }
 0x1a6   :  { %925 = vmax.xlane.f32.xlu0 %v916_v57  ;;  %v915_v63 = vsel %vm914_vm2, %v904_v55, -inf  ;;  %v879_v0 = vadd.f32 %v878_v56, %v877_v52 }
 0x1a7   :  { %923 = vmax.xlane.f32.xlu1 %v915_v63  ;;  %v886_v1 = vrot.slane %v885_v62, 1 }
 0x1a8   :  { %v880_v2 = vrot.slane %v879_v0, 1 }
 0x1a9   :  { %v1290_v3 = vpop.eup %1289  ;;  %v887_v59 = vadd.f32 %v886_v1, %v885_v62 }
 0x1aa   :  { %v1292_v4 = vpop.eup %1291  ;;  %v895_v5 = vmul.f32 0.6931472, %v1290_v3  ;;  %v881_v6 = vadd.f32 %v880_v2, %v879_v0 }
 0x1ab   :  { %v893_v60 = vmul.f32 0.6931472, %v1292_v4  ;;  %1297 = vlog2.f32 %v887_v59 }
 0x1ac   :  { %v907_v7 = vadd.f32 %v895_v5, %v1520_v18  ;;  %1299 = vlog2.f32 %v881_v6 }
 0x1ad   :  { %v906_v8 = vadd.f32 %v893_v60, %v1522_v19 }
 0x1ae   :  { %v918_v9 = vsel %vm914_vm2, %v907_v7, -inf }
 0x1af   :  { %929 = vmax.xlane.f32.xlu0 %v918_v9  ;;  %v917_v10 = vsel %vm914_vm2, %v906_v8, -inf }
 0x1b0   :  { %v1294_v11 = vpop.eup %1293  ;;  %927 = vmax.xlane.f32.xlu1 %v917_v10 }
 0x1b1   :  { %v1296_v12 = vpop.eup %1295  ;;  %v899_v13 = vmul.f32 0.6931472, %v1294_v11 }
 0x1b2   :  { %v897_v14 = vmul.f32 0.6931472, %v1296_v12 }
 0x1b3   :  { %v909_v15 = vadd.f32 %v899_v13, %v1526_v41  ;;  %v1004_v13 = vstv %s1003_s0 }
 0x1b4   :  { %v908_v16 = vadd.f32 %v897_v14, %v1528_v42 }
 0x1b5   :  { %v920_v18 = vsel %vm914_vm2, %v909_v15, -inf }
 0x1b6   :  { %933 = vmax.xlane.f32.xlu0 %v920_v18  ;;  %v919_v19 = vsel %vm914_vm2, %v908_v16, -inf }
 0x1b7   :  { %931 = vmax.xlane.f32.xlu1 %v919_v19 }
 0x1b8   :  { %v1298_v20 = vpop.eup %1297 }
 0x1b9   :  { %v1300_v21 = vpop.eup %1299  ;;  %v903_v22 = vmul.f32 0.6931472, %v1298_v20 }
 0x1ba   :  { %v901_v23 = vmul.f32 0.6931472, %v1300_v21 }
 0x1bb   :  { %v911_v24 = vadd.f32 %v903_v22, %v1532_v58  ;;  %v1014_v22 = vstv %s1071_s6 }
 0x1bc   :  { %v910_v25 = vadd.f32 %v901_v23, %v1534_v61 }
 0x1bd   :  { %v922_v41 = vsel %vm914_vm2, %v911_v24, -inf }
 0x1be   :  { %937 = vmax.xlane.f32.xlu0 %v922_v41  ;;  %v921_v42 = vsel %vm914_vm2, %v910_v25, -inf }
 0x1bf   :  { %935 = vmax.xlane.f32.xlu1 %v921_v42 }
 0x22f   :  { %v1565_v26 = vpop.xlane.xlu0 %925 }
 0x230   :  { %v940_v27 = vsub.f32 %v916_v57, %v1565_v26  ;;  %v1568_v28 = vpop.xlane.xlu1 %923 }
 0x231   :  { %v939_v29 = vsub.f32 %v915_v63, %v1568_v28 }
 0x232   :  { %v949_v30 = vmul.f32 1.442695, %v940_v27 }
 0x233   :  { %v947_v58 = vmul.f32 1.442695, %v939_v29 }
 0x234   :  { %1301 = vpow2.f32 %v949_v30 }
 0x235   :  { %1303 = vpow2.f32 %v947_v58 }
 0x238   :  { %v1571_v61 = vpop.xlane.xlu0 %929 }
 0x239   :  { %v942_v31 = vsub.f32 %v918_v9, %v1571_v61  ;;  %v1574_v32 = vpop.xlane.xlu1 %927 }
 0x23a   :  { %v941_v34 = vsub.f32 %v917_v10, %v1574_v32 }
 0x23b   :  { %v953_v35 = vmul.f32 1.442695, %v942_v31 }
 0x23c   :  { %v951_v36 = vmul.f32 1.442695, %v941_v34 }
 0x23d   :  { %1305 = vpow2.f32 %v953_v35 }
 0x23e   :  { %1307 = vpow2.f32 %v951_v36 }
 0x23f   :  { %v1577_v37 = vpop.xlane.xlu0 %933 }
 0x240   :  { %v944_v38 = vsub.f32 %v920_v18, %v1577_v37  ;;  %v1580_v39 = vpop.xlane.xlu1 %931 }
 0x241   :  { %v1302_v40 = vpop.eup %1301  ;;  %v943_v43 = vsub.f32 %v919_v19, %v1580_v39 }
 0x242   :  { %v1304_v33 = vpop.eup %1303  ;;  %v957_v17 = vmul.f32 1.442695, %v944_v38  ;;  %965 = vadd.xlane.f32.xlu0 %v1302_v40 }
 0x243   :  { %v955_v44 = vmul.f32 1.442695, %v943_v43  ;;  %963 = vadd.xlane.f32.xlu1 %v1304_v33 }
 0x244   :  { %1309 = vpow2.f32 %v957_v17 }
 0x245   :  { %1311 = vpow2.f32 %v955_v44 }
 0x247   :  { %v1583_v45 = vpop.xlane.xlu0 %937 }
 0x248   :  { %v946_v46 = vsub.f32 %v922_v41, %v1583_v45  ;;  %v1586_v47 = vpop.xlane.xlu1 %935 }
 0x249   :  { %v945_v48 = vsub.f32 %v921_v42, %v1586_v47 }
 0x24a   :  { %v1306_v49 = vpop.eup %1305  ;;  %v961_v50 = vmul.f32 1.442695, %v946_v46 }
 0x24b   :  { %v1308_v51 = vpop.eup %1307  ;;  %v959_v52 = vmul.f32 1.442695, %v945_v48  ;;  %969 = vadd.xlane.f32.xlu0 %v1306_v49 }
 0x24c   :  { %1313 = vpow2.f32 %v961_v50  ;;  %967 = vadd.xlane.f32.xlu1 %v1308_v51 }
 0x24d   :  { %1315 = vpow2.f32 %v959_v52 }
 0x251   :  { %v1310_v53 = vpop.eup %1309 }
 0x252   :  { %v1312_v54 = vpop.eup %1311  ;;  %973 = vadd.xlane.f32.xlu0 %v1310_v53 }
 0x253   :  { %971 = vadd.xlane.f32.xlu1 %v1312_v54 }
 0x259   :  { %v1314_v55 = vpop.eup %1313 }
 0x25a   :  { %v1316_v56 = vpop.eup %1315  ;;  %977 = vadd.xlane.f32.xlu0 %v1314_v55 }
 0x25b   :  { %975 = vadd.xlane.f32.xlu1 %v1316_v56 }
 0x2cb   :  { %v966_v57 = vpop.xlane.xlu0 %965 }
 0x2cc   :  { %v964_v62 = vpop.xlane.xlu1 %963  ;;  %1317 = vlog2.f32 %v966_v57 }
 0x2cd   :  { %1319 = vlog2.f32 %v964_v62 }
 0x2d4   :  { %v970_v63 = vpop.xlane.xlu0 %969 }
 0x2d5   :  { %1321 = vlog2.f32 %v970_v63  ;;  %v968_v0 = vpop.xlane.xlu1 %967 }
 0x2d6   :  { %1323 = vlog2.f32 %v968_v0 }
 0x2d9   :  { %v1318_v3 = vpop.eup %1317 }
 0x2da   :  { %v1320_v59 = vpop.eup %1319  ;;  %v982_v5 = vmul.f32 0.6931472, %v1318_v3 }
 0x2db   :  { %v974_v1 = vpop.xlane.xlu0 %973  ;;  %v980_v6 = vmul.f32 0.6931472, %v1320_v59 }
 0x2dc   :  { %1325 = vlog2.f32 %v974_v1  ;;  %v972_v2 = vpop.xlane.xlu1 %971  ;;  %v996_v10 = vadd.f32 %v982_v5, %v1565_v26 }
 0x2dd   :  { %1327 = vlog2.f32 %v972_v2  ;;  %v995_v11 = vadd.f32 %v980_v6, %v1568_v28 }
 0x2de   :  { %v1006_v18 = vmul.f32 %v1004_v13, %v996_v10 }
 0x2df   :  { %v1005_v19 = vmul.f32 %v1004_v13, %v995_v11 }
 0x2e0   :  { %v1016_v41 = vadd.f32 %v1014_v22, %v1006_v18 }
 0x2e1   :  { %v1015_v42 = vadd.f32 %v1014_v22, %v1005_v19 }
 0x2e2   :  { %v1322_v4 = vpop.eup %1321 }
 0x2e3   :  { %v1324_v60 = vpop.eup %1323  ;;  %v978_v7 = vpop.xlane.xlu0 %977  ;;  %v986_v12 = vmul.f32 0.6931472, %v1322_v4  ;;  %v1032_v34 = vsel %vm1031_vm3, %v1016_v41, %v1015_v42 }
 0x2e4   :  { %v984_v8 = vmul.f32 0.6931472, %v1324_v60  ;;  %1329 = vlog2.f32 %v978_v7  ;;  %v976_v9 = vpop.xlane.xlu1 %975 }
 0x2e5   :  { %1331 = vlog2.f32 %v976_v9  ;;  %v998_v20 = vadd.f32 %v986_v12, %v1571_v61 }
 0x2e6   :  { %v997_v14 = vadd.f32 %v984_v8, %v1574_v32 }
 0x2e7   :  { %v1008_v26 = vmul.f32 %v1004_v13, %v998_v20 }
 0x2e8   :  { %v1007_v23 = vmul.f32 %v1004_v13, %v997_v14 }
 0x2e9   :  { %v1326_v15 = vpop.eup %1325  ;;  %v1018_v31 = vadd.f32 %v1014_v22, %v1008_v26 }
 0x2ea   :  { %v1328_v16 = vpop.eup %1327  ;;  %v990_v21 = vmul.f32 0.6931472, %v1326_v15  ;;  %v1017_v28 = vadd.f32 %v1014_v22, %v1007_v23 }
 0x2eb   :  { %v988_v24 = vmul.f32 0.6931472, %v1328_v16 }
 0x2ec   :  { %v1000_v27 = vadd.f32 %v990_v21, %v1577_v37  ;;  %v1034_v38 = vsel %vm1033_vm4, %v1017_v28, %v1032_v34 }
 0x2ed   :  { %v999_v25 = vadd.f32 %v988_v24, %v1580_v39  ;;  %v1036_v33 = vsel %vm1035_vm5, %v1018_v31, %v1034_v38 }
 0x2ee   :  { %v1010_v32 = vmul.f32 %v1004_v13, %v1000_v27 }
 0x2ef   :  { %v1009_v29 = vmul.f32 %v1004_v13, %v999_v25 }
 0x2f0   :  { %v1020_v43 = vadd.f32 %v1014_v22, %v1010_v32 }
 0x2f1   :  { %v1330_v30 = vpop.eup %1329  ;;  %v1019_v35 = vadd.f32 %v1014_v22, %v1009_v29 }
 0x2f2   :  { %v1332_v58 = vpop.eup %1331  ;;  %v994_v61 = vmul.f32 0.6931472, %v1330_v30 }
 0x2f3   :  { %v992_v36 = vmul.f32 0.6931472, %v1332_v58  ;;  %v1038_v44 = vsel %vm1037_vm6, %v1019_v35, %v1036_v33 }
 0x2f4   :  { %v1002_v39 = vadd.f32 %v994_v61, %v1583_v45  ;;  %v1040_v49 = vsel %vm1039_vm7, %v1020_v43, %v1038_v44 }
 0x2f5   :  { %v1001_v40 = vadd.f32 %v992_v36, %v1586_v47 }
 0x2f6   :  { %v1012_v37 = vmul.f32 %v1004_v13, %v1002_v39 }
 0x2f7   :  { %v1011_v17 = vmul.f32 %v1004_v13, %v1001_v40 }
 0x2f8   :  { %v1022_v46 = vadd.f32 %v1014_v22, %v1012_v37 }
 0x2f9   :  { %v1021_v48 = vadd.f32 %v1014_v22, %v1011_v17 }
 0x2fb   :  { %v1042_v50 = vsel %vm1041_vm8, %v1021_v48, %v1040_v49 }
 0x2fc   :  { %v1044_v51 = vsel %vm1043_vm9, %v1022_v46, %v1042_v50 }
 0x2fd   :  { %1046 = vst [vmem:[#allocation8] sm:$0xff] %v1044_v51 }
 0x2fe   :  { %1376 = shalt.err (!%p1373_p0)
}
 0x2ff   :  { %1056 = dma.vmem_to_hbm [thread:$0]  %s1054_s8, 128, %s1604_s4, [#allocation5]  }
 0x300   :  { %1389 = dma.done.wait [#allocation5], 128  }
 0x301   :  { %1390 = vsyncadd [#allocation5], 4294967168 }
 0x302   :  { %1060 = vsyncpa [#allocation4], 1 }
 0x303   :  { %1061 = vsyncpa [#allocation5], 1 }
 0x304   :  { %1062 = vsyncpa [#allocation6], 1 }

</bundles_post_ra>
